<compile_context>
chip_gen: v5e
topology: v5e:2x2
jax: 0.10.0
libtpu: 0.0.40
codegen_flags: <defaults>
</compile_context>

<pallas_src>
import functools

import jax
import jax.numpy as jnp
from jax.experimental import pallas as pl
from jax.experimental.pallas import tpu as pltpu


def _mha_kernel(*refs, num_heads: int, has_mask: bool):
    """Fused MHA for one (batch, query-tile) grid step.

    q ref: (tq, E); k/v refs: (T, E); optional mask-bias: (tq, T) f32;
    wq/wk/wv/w_proj: (E, E); b_proj: (1, E); output: (tq, E).
    """
    if has_mask:
        (q_ref, k_ref, v_ref, mb_ref,
         wq_ref, wk_ref, wv_ref, wp_ref, bp_ref, o_ref) = refs
    else:
        (q_ref, k_ref, v_ref,
         wq_ref, wk_ref, wv_ref, wp_ref, bp_ref, o_ref) = refs
        mb_ref = None

    _, E = q_ref.shape
    Dh = E // num_heads
    dt = q_ref.dtype
    scale = float(E) ** -0.5  # reference scales by embed_dim (C), not head_size

    # Native-dtype operands straight to the MXU; f32 accumulation only.
    qn = q_ref[...]
    kn = k_ref[...]
    vn = v_ref[...]

    # Packed QKV projections: one big (·,E)@(E,E) matmul each.
    # Softmax scale folded into Q once, then cast back to the input dtype so the
    # downstream matmuls also run at the native MXU rate.
    Q = (jnp.dot(qn, wq_ref[...], preferred_element_type=jnp.float32) * scale).astype(dt)
    K = jnp.dot(kn, wk_ref[...], preferred_element_type=jnp.float32).astype(dt)
    V = jnp.dot(vn, wv_ref[...], preferred_element_type=jnp.float32).astype(dt)

    if has_mask:
        mask_bias = mb_ref[...]  # (tq, T) f32: 0 where visible, -1e30 where masked

    # Per-head attention.  Static unroll is fine for H <= 4 (demo H = 4).
    # TODO(synk): for H > 4 convert to lax.fori_loop over a VMEM ctx scratch, and
    # for Dh < 128 pad/batch heads so the QK^T / P@V contractions fill the MXU.
    ctxs = []
    for h in range(num_heads):
        lo = h * Dh
        qh = Q[:, lo:lo + Dh]
        kh = K[:, lo:lo + Dh]
        vh = V[:, lo:lo + Dh]

        s = jnp.dot(qh, kh.T, preferred_element_type=jnp.float32)  # (tq, T) f32
        if has_mask:
            s = s + mask_bias

        m = jnp.max(s, axis=-1, keepdims=True)
        p = jnp.exp(s - m)
        denom = jnp.sum(p, axis=-1, keepdims=True)
        # Exact reciprocal keeps bit-tight softmax; switch approx=True (EUP slot)
        # when ~1e-3 relative softmax error is acceptable.
        p = p * pl.reciprocal(denom, approx=False)
        # TODO(synk): attention-weight dropout skipped (inference / p=0 path).

        ctx_h = jnp.dot(p.astype(dt), vh, preferred_element_type=jnp.float32)
        ctxs.append(ctx_h.astype(dt))

    # Fold concat + output projection into ONE K=E matmul instead of H K=Dh
    # matmuls + H accumulator adds.
    ctx = jnp.concatenate(ctxs, axis=-1)                              # (tq, E)
    out = jnp.dot(ctx, wp_ref[...], preferred_element_type=jnp.float32)
    out = out + bp_ref[...].astype(jnp.float32)
    # TODO(synk): output dropout skipped (inference / p=0 path).
    o_ref[...] = out.astype(o_ref.dtype)


def multihead_attention(q, k, v, wq, wk, wv, w_proj, b_proj,
                        attn_mask=None, *, num_heads: int):
    """q, k, v: (B, T, E).  wq/wk/wv/w_proj: (E, E) (per-head q/k/v weights packed
    column-wise).  b_proj: (E,).  attn_mask: optional (>=T, >=T), entries == 0 are
    masked out.  Returns (B, T, E) in q.dtype."""
    B, T, E = q.shape
    assert E % num_heads == 0, "embed_dim must be divisible by num_heads"
    has_mask = attn_mask is not None

    # Query-row tiling: keep the full sequence for small T, 128/256-row tiles for
    # long T so the (tq, T) score/prob intermediates stay bounded in vregs/VMEM.
    if T % 256 == 0:
        tq = 256
    elif T % 128 == 0:
        tq = 128
    else:
        tq = T
    nq = T // tq

    bias2d = b_proj.reshape(1, E)

    inputs = [q, k, v]
    in_specs = [
        pl.BlockSpec((None, tq, E), lambda b, i: (b, i, 0)),  # q tile
        pl.BlockSpec((None, T, E), lambda b, i: (b, 0, 0)),   # k (full seq)
        pl.BlockSpec((None, T, E), lambda b, i: (b, 0, 0)),   # v (full seq)
    ]
    if has_mask:
        # Additive bias computed once in the wrapper: finite large negative (not
        # -inf) so fully-masked rows give a uniform softmax instead of NaN.
        mask_bias = jnp.where(attn_mask[:T, :T] == 0,
                              jnp.float32(-1e30), jnp.float32(0.0))
        inputs.append(mask_bias)
        in_specs.append(pl.BlockSpec((tq, T), lambda b, i: (i, 0)))

    # Constant index maps => each weight/bias block is DMA'd once and stays
    # resident in VMEM across the whole grid.  For very large E on v7x (64 MiB
    # VMEM) additionally pass bf16 weights and add pipeline_mode=pl.Buffered(1)
    # on these specs to drop the unused second pipeline buffer.
    def resident(shape):
        return pl.BlockSpec(shape, lambda b, i: (0, 0))

    inputs += [wq, wk, wv, w_proj, bias2d]
    in_specs += [resident((E, E)), resident((E, E)), resident((E, E)),
                 resident((E, E)), resident((1, E))]

    itemsize = jnp.dtype(q.dtype).itemsize
    # Explicit VMEM budget (conservative: resident blocks counted double-buffered,
    # plus live f32 intermediates), floored at the 32 MiB scoped default.
    est = (
        2 * (2 * tq * E + 2 * T * E) * itemsize                    # q/out + k/v blocks
        + 2 * ((4 * E * E + E) * itemsize
               + (tq * T * 4 if has_mask else 0))                  # weights/bias/mask
        + (3 * T * E + 3 * tq * T + 2 * tq * E) * 4                # f32 intermediates
    )
    vmem_limit = int(min(100 * 1024 * 1024, max(32 * 1024 * 1024, 2 * est)))

    cost = pl.CostEstimate(
        flops=B * (8 * T * E * E + 4 * T * T * E),
        transcendentals=B * num_heads * T * T,
        bytes_accessed=itemsize * (4 * B * T * E + 4 * E * E + E)
        + (4 * T * T if has_mask else 0),
    )

    kernel = functools.partial(_mha_kernel, num_heads=num_heads, has_mask=has_mask)

    return pl.pallas_call(
        kernel,
        out_shape=jax.ShapeDtypeStruct((B, T, E), q.dtype),
        grid_spec=pltpu.PrefetchScalarGridSpec(
            num_scalar_prefetch=0,
            grid=(B, nq),
            in_specs=in_specs,
            out_specs=pl.BlockSpec((None, tq, E), lambda b, i: (b, i, 0)),
        ),
        compiler_params=pltpu.CompilerParams(
            dimension_semantics=("parallel", "parallel"),  # shards across TCs on v7x
            vmem_limit_bytes=vmem_limit,
        ),
        cost_estimate=cost,
    )(*inputs)


def _mha_reference(q, k, v, wq, wk, wv, w_proj, b_proj, attn_mask, num_heads):
    """Plain-JAX reference mirroring the PyTorch module forward."""
    B, T, E = q.shape
    Dh = E // num_heads
    Q = q @ wq
    K = k @ wk
    V = v @ wv
    scale = E ** -0.5
    outs = []
    for h in range(num_heads):
        lo = h * Dh
        s = jnp.einsum("btd,bsd->bts", Q[..., lo:lo + Dh], K[..., lo:lo + Dh]) * scale
        if attn_mask is not None:
            s = jnp.where(attn_mask[:T, :T] == 0, -jnp.inf, s)
        p = jax.nn.softmax(s, axis=-1)
        outs.append(jnp.einsum("bts,bsd->btd", p, V[..., lo:lo + Dh]))
    ctx = jnp.concatenate(outs, axis=-1)
    return ctx @ w_proj + b_proj


if __name__ == "__main__":
    key = jax.random.PRNGKey(0)
    B, T, E, H = 2, 8, 32, 4  # batch=2, seq=8, embed_dim=32, num_heads=4 (head_size=8)

    keys = jax.random.split(key, 8)
    q = jax.random.normal(keys[0], (B, T, E), jnp.float32)
    k = jax.random.normal(keys[1], (B, T, E), jnp.float32)
    v = jax.random.normal(keys[2], (B, T, E), jnp.float32)

    w_scale = 1.0 / (E ** 0.5)
    # column block h of wq/wk/wv corresponds to head h's Linear(E, head_size) weight
    wq = jax.random.normal(keys[3], (E, E), jnp.float32) * w_scale
    wk = jax.random.normal(keys[4], (E, E), jnp.float32) * w_scale
    wv = jax.random.normal(keys[5], (E, E), jnp.float32) * w_scale
    w_proj = jax.random.normal(keys[6], (E, E), jnp.float32) * w_scale
    b_proj = jax.random.normal(keys[7], (E,), jnp.float32) * 0.1

    attn_mask = jnp.tril(jnp.ones((T, T), jnp.int32))  # causal mask (0 == masked)

    # masked path
    out = multihead_attention(q, k, v, wq, wk, wv, w_proj, b_proj,
                              attn_mask, num_heads=H)
    jax.block_until_ready(out)
    ref = _mha_reference(q, k, v, wq, wk, wv, w_proj, b_proj, attn_mask, H)
    assert out.shape == (B, T, E) and out.dtype == q.dtype
    assert jnp.allclose(out, ref, atol=2e-5, rtol=2e-5), float(jnp.max(jnp.abs(out - ref)))

    # unmasked path (attn_mask=None)
    out2 = multihead_attention(q, k, v, wq, wk, wv, w_proj, b_proj,
                               None, num_heads=H)
    jax.block_until_ready(out2)
    ref2 = _mha_reference(q, k, v, wq, wk, wv, w_proj, b_proj, None, H)
    assert jnp.allclose(out2, ref2, atol=2e-5, rtol=2e-5), float(jnp.max(jnp.abs(out2 - ref2)))

    print("KERNEL_OK")
</pallas_src>

<mosaic_0001>
module attributes {stable_mosaic.version = 11 : i64} {
  func.func @_mha_kernel(%arg0: i32, %arg1: i32, %arg2: memref<1x8x32xf32, #tpu.memory_space<vmem>>, %arg3: memref<1x8x32xf32, #tpu.memory_space<vmem>>, %arg4: memref<1x8x32xf32, #tpu.memory_space<vmem>>, %arg5: memref<8x8xf32, #tpu.memory_space<vmem>>, %arg6: memref<32x32xf32, #tpu.memory_space<vmem>>, %arg7: memref<32x32xf32, #tpu.memory_space<vmem>>, %arg8: memref<32x32xf32, #tpu.memory_space<vmem>>, %arg9: memref<32x32xf32, #tpu.memory_space<vmem>>, %arg10: memref<1x32xf32, #tpu.memory_space<vmem>>, %arg11: memref<1x8x32xf32, #tpu.memory_space<vmem>>) attributes {dimension_semantics = [#tpu.dimension_semantics<parallel>, #tpu.dimension_semantics<parallel>], iteration_bounds = array<i64: 2, 1>, scalar_prefetch = 0 : i64, scratch_operands = 0 : i64, tpu.core_type = #tpu.core_type<tc>, window_params = [{transform_indices = @transform_0, window_bounds = array<i64: 1, 8, 32>}, {transform_indices = @transform_1, window_bounds = array<i64: 1, 8, 32>}, {transform_indices = @transform_2, window_bounds = array<i64: 1, 8, 32>}, {transform_indices = @transform_3, window_bounds = array<i64: 8, 8>}, {pipeline_mode = #tpu.pipeline_mode<synchronous>, transform_indices = @transform_4, window_bounds = array<i64: 32, 32>}, {pipeline_mode = #tpu.pipeline_mode<synchronous>, transform_indices = @transform_5, window_bounds = array<i64: 32, 32>}, {pipeline_mode = #tpu.pipeline_mode<synchronous>, transform_indices = @transform_6, window_bounds = array<i64: 32, 32>}, {pipeline_mode = #tpu.pipeline_mode<synchronous>, transform_indices = @transform_7, window_bounds = array<i64: 32, 32>}, {pipeline_mode = #tpu.pipeline_mode<synchronous>, transform_indices = @transform_8, window_bounds = array<i64: 1, 32>}, {transform_indices = @transform_9, window_bounds = array<i64: 1, 8, 32>}]} {
    %c0 = arith.constant 0 : index
    %c0_0 = arith.constant 0 : index
    %c0_1 = arith.constant 0 : index
    %0 = vector.load %arg2[%c0, %c0_0, %c0_1] : memref<1x8x32xf32, #tpu.memory_space<vmem>>, vector<1x8x32xf32>
    %1 = vector.shape_cast %0 : vector<1x8x32xf32> to vector<8x32xf32>
    %c0_2 = arith.constant 0 : index
    %c0_3 = arith.constant 0 : index
    %c0_4 = arith.constant 0 : index
    %2 = vector.load %arg3[%c0_2, %c0_3, %c0_4] : memref<1x8x32xf32, #tpu.memory_space<vmem>>, vector<1x8x32xf32>
    %3 = vector.shape_cast %2 : vector<1x8x32xf32> to vector<8x32xf32>
    %c0_5 = arith.constant 0 : index
    %c0_6 = arith.constant 0 : index
    %c0_7 = arith.constant 0 : index
    %4 = vector.load %arg4[%c0_5, %c0_6, %c0_7] : memref<1x8x32xf32, #tpu.memory_space<vmem>>, vector<1x8x32xf32>
    %5 = vector.shape_cast %4 : vector<1x8x32xf32> to vector<8x32xf32>
    %c0_8 = arith.constant 0 : index
    %c0_9 = arith.constant 0 : index
    %6 = vector.load %arg6[%c0_8, %c0_9] : memref<32x32xf32, #tpu.memory_space<vmem>>, vector<32x32xf32>
    %cst = arith.constant dense<0.000000e+00> : vector<8x32xf32>
    %7 = tpu.matmul %1, %6, %cst {dimension_numbers = #tpu.dot_dimension_numbers<[1], [0], [0], [1], [0, 0, 1, 1], [], []>} : vector<8x32xf32>, vector<32x32xf32>, vector<8x32xf32> -> vector<8x32xf32>
    %cst_10 = arith.constant 0.176776692 : f32
    %8 = vector.broadcast %cst_10 : f32 to vector<8x32xf32>
    %9 = arith.mulf %7, %8 : vector<8x32xf32>
    %c0_11 = arith.constant 0 : index
    %c0_12 = arith.constant 0 : index
    %10 = vector.load %arg7[%c0_11, %c0_12] : memref<32x32xf32, #tpu.memory_space<vmem>>, vector<32x32xf32>
    %cst_13 = arith.constant dense<0.000000e+00> : vector<8x32xf32>
    %11 = tpu.matmul %3, %10, %cst_13 {dimension_numbers = #tpu.dot_dimension_numbers<[1], [0], [0], [1], [0, 0, 1, 1], [], []>} : vector<8x32xf32>, vector<32x32xf32>, vector<8x32xf32> -> vector<8x32xf32>
    %c0_14 = arith.constant 0 : index
    %c0_15 = arith.constant 0 : index
    %12 = vector.load %arg8[%c0_14, %c0_15] : memref<32x32xf32, #tpu.memory_space<vmem>>, vector<32x32xf32>
    %cst_16 = arith.constant dense<0.000000e+00> : vector<8x32xf32>
    %13 = tpu.matmul %5, %12, %cst_16 {dimension_numbers = #tpu.dot_dimension_numbers<[1], [0], [0], [1], [0, 0, 1, 1], [], []>} : vector<8x32xf32>, vector<32x32xf32>, vector<8x32xf32> -> vector<8x32xf32>
    %c0_17 = arith.constant 0 : index
    %c0_18 = arith.constant 0 : index
    %14 = vector.load %arg5[%c0_17, %c0_18] : memref<8x8xf32, #tpu.memory_space<vmem>>, vector<8x8xf32>
    %15 = vector.extract_strided_slice %9 {offsets = [0, 0], sizes = [8, 8], strides = [1, 1]} : vector<8x32xf32> to vector<8x8xf32>
    %16 = vector.extract_strided_slice %11 {offsets = [0, 0], sizes = [8, 8], strides = [1, 1]} : vector<8x32xf32> to vector<8x8xf32>
    %17 = vector.extract_strided_slice %13 {offsets = [0, 0], sizes = [8, 8], strides = [1, 1]} : vector<8x32xf32> to vector<8x8xf32>
    %18 = tpu.transpose %16, [1, 0] : vector<8x8xf32> -> vector<8x8xf32>
    %cst_19 = arith.constant dense<0.000000e+00> : vector<8x8xf32>
    %19 = tpu.matmul %15, %18, %cst_19 {dimension_numbers = #tpu.dot_dimension_numbers<[1], [0], [0], [1], [0, 0, 1, 1], [], []>} : vector<8x8xf32>, vector<8x8xf32>, vector<8x8xf32> -> vector<8x8xf32>
    %20 = arith.addf %19, %14 : vector<8x8xf32>
    %cst_20 = arith.constant dense<0xFF800000> : vector<8xf32>
    %21 = vector.multi_reduction <maximumf>, %20, %cst_20 [1] : vector<8x8xf32> to vector<8xf32>
    %22 = vector.shape_cast %21 : vector<8xf32> to vector<8x1xf32>
    %23 = vector.broadcast %22 : vector<8x1xf32> to vector<8x8xf32>
    %24 = arith.subf %20, %23 : vector<8x8xf32>
    %25 = math.exp %24 : vector<8x8xf32>
    %cst_21 = arith.constant dense<0.000000e+00> : vector<8xf32>
    %26 = vector.multi_reduction <add>, %25, %cst_21 [1] : vector<8x8xf32> to vector<8xf32>
    %27 = vector.shape_cast %26 : vector<8xf32> to vector<8x1xf32>
    %28 = tpu.reciprocal %27 : vector<8x1xf32> -> vector<8x1xf32>
    %29 = vector.broadcast %28 : vector<8x1xf32> to vector<8x8xf32>
    %30 = arith.mulf %25, %29 : vector<8x8xf32>
    %cst_22 = arith.constant dense<0.000000e+00> : vector<8x8xf32>
    %31 = tpu.matmul %30, %17, %cst_22 {dimension_numbers = #tpu.dot_dimension_numbers<[1], [0], [0], [1], [0, 0, 1, 1], [], []>} : vector<8x8xf32>, vector<8x8xf32>, vector<8x8xf32> -> vector<8x8xf32>
    %32 = vector.extract_strided_slice %9 {offsets = [0, 8], sizes = [8, 8], strides = [1, 1]} : vector<8x32xf32> to vector<8x8xf32>
    %33 = vector.extract_strided_slice %11 {offsets = [0, 8], sizes = [8, 8], strides = [1, 1]} : vector<8x32xf32> to vector<8x8xf32>
    %34 = vector.extract_strided_slice %13 {offsets = [0, 8], sizes = [8, 8], strides = [1, 1]} : vector<8x32xf32> to vector<8x8xf32>
    %35 = tpu.transpose %33, [1, 0] : vector<8x8xf32> -> vector<8x8xf32>
    %cst_23 = arith.constant dense<0.000000e+00> : vector<8x8xf32>
    %36 = tpu.matmul %32, %35, %cst_23 {dimension_numbers = #tpu.dot_dimension_numbers<[1], [0], [0], [1], [0, 0, 1, 1], [], []>} : vector<8x8xf32>, vector<8x8xf32>, vector<8x8xf32> -> vector<8x8xf32>
    %37 = arith.addf %36, %14 : vector<8x8xf32>
    %cst_24 = arith.constant dense<0xFF800000> : vector<8xf32>
    %38 = vector.multi_reduction <maximumf>, %37, %cst_24 [1] : vector<8x8xf32> to vector<8xf32>
    %39 = vector.shape_cast %38 : vector<8xf32> to vector<8x1xf32>
    %40 = vector.broadcast %39 : vector<8x1xf32> to vector<8x8xf32>
    %41 = arith.subf %37, %40 : vector<8x8xf32>
    %42 = math.exp %41 : vector<8x8xf32>
    %cst_25 = arith.constant dense<0.000000e+00> : vector<8xf32>
    %43 = vector.multi_reduction <add>, %42, %cst_25 [1] : vector<8x8xf32> to vector<8xf32>
    %44 = vector.shape_cast %43 : vector<8xf32> to vector<8x1xf32>
    %45 = tpu.reciprocal %44 : vector<8x1xf32> -> vector<8x1xf32>
    %46 = vector.broadcast %45 : vector<8x1xf32> to vector<8x8xf32>
    %47 = arith.mulf %42, %46 : vector<8x8xf32>
    %cst_26 = arith.constant dense<0.000000e+00> : vector<8x8xf32>
    %48 = tpu.matmul %47, %34, %cst_26 {dimension_numbers = #tpu.dot_dimension_numbers<[1], [0], [0], [1], [0, 0, 1, 1], [], []>} : vector<8x8xf32>, vector<8x8xf32>, vector<8x8xf32> -> vector<8x8xf32>
    %49 = vector.extract_strided_slice %9 {offsets = [0, 16], sizes = [8, 8], strides = [1, 1]} : vector<8x32xf32> to vector<8x8xf32>
    %50 = vector.extract_strided_slice %11 {offsets = [0, 16], sizes = [8, 8], strides = [1, 1]} : vector<8x32xf32> to vector<8x8xf32>
    %51 = vector.extract_strided_slice %13 {offsets = [0, 16], sizes = [8, 8], strides = [1, 1]} : vector<8x32xf32> to vector<8x8xf32>
    %52 = tpu.transpose %50, [1, 0] : vector<8x8xf32> -> vector<8x8xf32>
    %cst_27 = arith.constant dense<0.000000e+00> : vector<8x8xf32>
    %53 = tpu.matmul %49, %52, %cst_27 {dimension_numbers = #tpu.dot_dimension_numbers<[1], [0], [0], [1], [0, 0, 1, 1], [], []>} : vector<8x8xf32>, vector<8x8xf32>, vector<8x8xf32> -> vector<8x8xf32>
    %54 = arith.addf %53, %14 : vector<8x8xf32>
    %cst_28 = arith.constant dense<0xFF800000> : vector<8xf32>
    %55 = vector.multi_reduction <maximumf>, %54, %cst_28 [1] : vector<8x8xf32> to vector<8xf32>
    %56 = vector.shape_cast %55 : vector<8xf32> to vector<8x1xf32>
    %57 = vector.broadcast %56 : vector<8x1xf32> to vector<8x8xf32>
    %58 = arith.subf %54, %57 : vector<8x8xf32>
    %59 = math.exp %58 : vector<8x8xf32>
    %cst_29 = arith.constant dense<0.000000e+00> : vector<8xf32>
    %60 = vector.multi_reduction <add>, %59, %cst_29 [1] : vector<8x8xf32> to vector<8xf32>
    %61 = vector.shape_cast %60 : vector<8xf32> to vector<8x1xf32>
    %62 = tpu.reciprocal %61 : vector<8x1xf32> -> vector<8x1xf32>
    %63 = vector.broadcast %62 : vector<8x1xf32> to vector<8x8xf32>
    %64 = arith.mulf %59, %63 : vector<8x8xf32>
    %cst_30 = arith.constant dense<0.000000e+00> : vector<8x8xf32>
    %65 = tpu.matmul %64, %51, %cst_30 {dimension_numbers = #tpu.dot_dimension_numbers<[1], [0], [0], [1], [0, 0, 1, 1], [], []>} : vector<8x8xf32>, vector<8x8xf32>, vector<8x8xf32> -> vector<8x8xf32>
    %66 = vector.extract_strided_slice %9 {offsets = [0, 24], sizes = [8, 8], strides = [1, 1]} : vector<8x32xf32> to vector<8x8xf32>
    %67 = vector.extract_strided_slice %11 {offsets = [0, 24], sizes = [8, 8], strides = [1, 1]} : vector<8x32xf32> to vector<8x8xf32>
    %68 = vector.extract_strided_slice %13 {offsets = [0, 24], sizes = [8, 8], strides = [1, 1]} : vector<8x32xf32> to vector<8x8xf32>
    %69 = tpu.transpose %67, [1, 0] : vector<8x8xf32> -> vector<8x8xf32>
    %cst_31 = arith.constant dense<0.000000e+00> : vector<8x8xf32>
    %70 = tpu.matmul %66, %69, %cst_31 {dimension_numbers = #tpu.dot_dimension_numbers<[1], [0], [0], [1], [0, 0, 1, 1], [], []>} : vector<8x8xf32>, vector<8x8xf32>, vector<8x8xf32> -> vector<8x8xf32>
    %71 = arith.addf %70, %14 : vector<8x8xf32>
    %cst_32 = arith.constant dense<0xFF800000> : vector<8xf32>
    %72 = vector.multi_reduction <maximumf>, %71, %cst_32 [1] : vector<8x8xf32> to vector<8xf32>
    %73 = vector.shape_cast %72 : vector<8xf32> to vector<8x1xf32>
    %74 = vector.broadcast %73 : vector<8x1xf32> to vector<8x8xf32>
    %75 = arith.subf %71, %74 : vector<8x8xf32>
    %76 = math.exp %75 : vector<8x8xf32>
    %cst_33 = arith.constant dense<0.000000e+00> : vector<8xf32>
    %77 = vector.multi_reduction <add>, %76, %cst_33 [1] : vector<8x8xf32> to vector<8xf32>
    %78 = vector.shape_cast %77 : vector<8xf32> to vector<8x1xf32>
    %79 = tpu.reciprocal %78 : vector<8x1xf32> -> vector<8x1xf32>
    %80 = vector.broadcast %79 : vector<8x1xf32> to vector<8x8xf32>
    %81 = arith.mulf %76, %80 : vector<8x8xf32>
    %cst_34 = arith.constant dense<0.000000e+00> : vector<8x8xf32>
    %82 = tpu.matmul %81, %68, %cst_34 {dimension_numbers = #tpu.dot_dimension_numbers<[1], [0], [0], [1], [0, 0, 1, 1], [], []>} : vector<8x8xf32>, vector<8x8xf32>, vector<8x8xf32> -> vector<8x8xf32>
    %83 = tpu.concatenate %31, %48, %65, %82 in 1 : vector<8x8xf32>, vector<8x8xf32>, vector<8x8xf32>, vector<8x8xf32> -> vector<8x32xf32>
    %c0_35 = arith.constant 0 : index
    %c0_36 = arith.constant 0 : index
    %84 = vector.load %arg9[%c0_35, %c0_36] : memref<32x32xf32, #tpu.memory_space<vmem>>, vector<32x32xf32>
    %cst_37 = arith.constant dense<0.000000e+00> : vector<8x32xf32>
    %85 = tpu.matmul %83, %84, %cst_37 {dimension_numbers = #tpu.dot_dimension_numbers<[1], [0], [0], [1], [0, 0, 1, 1], [], []>} : vector<8x32xf32>, vector<32x32xf32>, vector<8x32xf32> -> vector<8x32xf32>
    %c0_38 = arith.constant 0 : index
    %c0_39 = arith.constant 0 : index
    %86 = vector.load %arg10[%c0_38, %c0_39] : memref<1x32xf32, #tpu.memory_space<vmem>>, vector<1x32xf32>
    %87 = vector.broadcast %86 : vector<1x32xf32> to vector<8x32xf32>
    %88 = arith.addf %85, %87 : vector<8x32xf32>
    %c0_40 = arith.constant 0 : index
    %c0_41 = arith.constant 0 : index
    %c0_42 = arith.constant 0 : index
    %89 = vector.load %arg11[%c0_40, %c0_41, %c0_42] : memref<1x8x32xf32, #tpu.memory_space<vmem>>, vector<1x8x32xf32>
    %90 = vector.shape_cast %89 : vector<1x8x32xf32> to vector<8x32xf32>
    %91 = vector.shape_cast %88 : vector<8x32xf32> to vector<1x8x32xf32>
    tpu.vector_store %arg11[%c0_40, %c0_41, %c0_42], %91 {strides = array<i32>} : memref<1x8x32xf32, #tpu.memory_space<vmem>>, vector<1x8x32xf32>,
    return
  }
  func.func @transform_0(%arg0: i32, %arg1: i32) -> (i32, i32, i32) {
    %c0_i32 = arith.constant 0 : i32
    %c0_i32_0 = arith.constant 0 : i32
    return %arg0, %arg1, %c0_i32 : i32, i32, i32
  }
  func.func @transform_1(%arg0: i32, %arg1: i32) -> (i32, i32, i32) {
    %c0_i32 = arith.constant 0 : i32
    %c0_i32_0 = arith.constant 0 : i32
    %c0_i32_1 = arith.constant 0 : i32
    return %arg0, %c0_i32, %c0_i32_0 : i32, i32, i32
  }
  func.func @transform_2(%arg0: i32, %arg1: i32) -> (i32, i32, i32) {
    %c0_i32 = arith.constant 0 : i32
    %c0_i32_0 = arith.constant 0 : i32
    %c0_i32_1 = arith.constant 0 : i32
    return %arg0, %c0_i32, %c0_i32_0 : i32, i32, i32
  }
  func.func @transform_3(%arg0: i32, %arg1: i32) -> (i32, i32) {
    %c0_i32 = arith.constant 0 : i32
    %c0_i32_0 = arith.constant 0 : i32
    return %arg1, %c0_i32 : i32, i32
  }
  func.func @transform_4(%arg0: i32, %arg1: i32) -> (i32, i32) {
    %c0_i32 = arith.constant 0 : i32
    %c0_i32_0 = arith.constant 0 : i32
    %c0_i32_1 = arith.constant 0 : i32
    return %c0_i32, %c0_i32_0 : i32, i32
  }
  func.func @transform_5(%arg0: i32, %arg1: i32) -> (i32, i32) {
    %c0_i32 = arith.constant 0 : i32
    %c0_i32_0 = arith.constant 0 : i32
    %c0_i32_1 = arith.constant 0 : i32
    return %c0_i32, %c0_i32_0 : i32, i32
  }
  func.func @transform_6(%arg0: i32, %arg1: i32) -> (i32, i32) {
    %c0_i32 = arith.constant 0 : i32
    %c0_i32_0 = arith.constant 0 : i32
    %c0_i32_1 = arith.constant 0 : i32
    return %c0_i32, %c0_i32_0 : i32, i32
  }
  func.func @transform_7(%arg0: i32, %arg1: i32) -> (i32, i32) {
    %c0_i32 = arith.constant 0 : i32
    %c0_i32_0 = arith.constant 0 : i32
    %c0_i32_1 = arith.constant 0 : i32
    return %c0_i32, %c0_i32_0 : i32, i32
  }
  func.func @transform_8(%arg0: i32, %arg1: i32) -> (i32, i32) {
    %c0_i32 = arith.constant 0 : i32
    %c0_i32_0 = arith.constant 0 : i32
    %c0_i32_1 = arith.constant 0 : i32
    return %c0_i32, %c0_i32_0 : i32, i32
  }
  func.func @transform_9(%arg0: i32, %arg1: i32) -> (i32, i32, i32) {
    %c0_i32 = arith.constant 0 : i32
    %c0_i32_0 = arith.constant 0 : i32
    return %arg0, %arg1, %c0_i32 : i32, i32, i32
  }
}

</mosaic_0001>

<bundles_post_ra>
// kernel: tpu_custom_call.1
= control target key start
LH: loop header
LB: loop body
LE: loop exit
PB: predicated region body
PF: predicated region fallthrough
CT: control target
= control target key end

     0   :  { %s2050_s0 = inlined_call_operand.hbm [shape: f32[2,8,32], index: 0, kind: input, shape index: {}]   ;;  %s2051_s1 = inlined_call_operand.hbm [shape: f32[2,8,32], index: 1, kind: input, shape index: {}]   ;;  %s2052_s2 = inlined_call_operand.hbm [shape: f32[2,8,32], index: 2, kind: input, shape index: {}]   ;;  %s2053_s3 = inlined_call_operand.hbm [shape: f32[8,8], index: 3, kind: input, shape index: {}]   ;;  %s2054_s4 = inlined_call_operand.hbm [shape: f32[32,32], index: 4, kind: input, shape index: {}]   ;;  %s2055_s5 = inlined_call_operand.hbm [shape: f32[32,32], index: 5, kind: input, shape index: {}]   ;;  %s2056_s6 = inlined_call_operand.hbm [shape: f32[32,32], index: 6, kind: input, shape index: {}]   ;;  %s2057_s7 = inlined_call_operand.hbm [shape: f32[32,32], index: 7, kind: input, shape index: {}]   ;;  %s2058_s8 = inlined_call_operand.vmem [shape: f32[1,32], index: 8, kind: input, shape index: {}]   ;;  %s2059_s9 = inlined_call_operand.hbm [shape: f32[2,8,32], index: 9, kind: output, shape index: {}]  }
   0x1   :  { %2071 = sst [smem:[#allocation29_spill]] %s2051_s1 }
   0x2   :  { %2072 = sst [smem:[#allocation30_spill]] %s2053_s3 }
   0x3   :  { %2073 = sst [smem:[#allocation31_spill]] %s2054_s4 }
   0x4   :  { %2074 = sst [smem:[#allocation32_spill]] %s2055_s5 }
   0x5   :  { %2075 = sst [smem:[#allocation33_spill]] %s2056_s6 }
   0x6   :  { %2076 = sst [smem:[#allocation34_spill]] %s2057_s7 }
   0x7   :  { %2077 = sst [smem:[#allocation35_spill]] %s2058_s8 }
   0x8   :  { %14 = vsyncpa [#allocation3], 0 }
   0x9   :  { %16 = vsyncpa [#allocation3 + $0x1], 0 }
   0xa   :  { %17 = vsyncpa [#allocation6], 0 }
   0xb   :  { %19 = vsyncpa [#allocation6 + $0x1], 0 }
   0xc   :  { %20 = vsyncpa [#allocation9], 0 }
   0xd   :  { %21 = vsyncpa [#allocation12], 0 }
   0xe   :  { %22 = vsyncpa [#allocation15], 0 }
   0xf   :  { %23 = vsyncpa [#allocation4], 0 }
  0x10   :  { %25 = vsyncpa [#allocation4 + $0x1], 0  ;;  %s1761_s30 = smov 0   ;;  %s1763_s10 = smov 0  }
  0x11   :  { %s1765_s11 = smov 0   ;;  %s1767_s12 = smov 0  }
  0x12   :  { %s1769_s13 = smov 0   ;;  %s1771_s14 = smov 0  }
  0x13 LB: > { %2078 = sst [smem:[#allocation23_spill]] %s1676_s30  ;;  %s1792_s15 = sadd.s32 4294967295, %s1696_s14   ;;  %s1696_s14 = sphi %s1771_s14, %s31_s14   ;;  %s1692_s13 = sphi %s1769_s13, %s2110_s13   ;;  %s1688_s12 = sphi %s1767_s12, %s2105_s12   ;;  %s1684_s11 = sphi %s1765_s11, %s2109_s11   ;;  %s1680_s10 = sphi %s1763_s10, %s2108_s10   ;;  %s1676_s30 = sphi %s1761_s30, %s2107_s30  }
  0x14   : > { %2079 = sst [smem:[#allocation24_spill]] %s1692_s13  ;;  %p1167_p0 = scmp.ge.s32.totalorder %s1696_s14, 1 }
  0x15   : > { %2080 = sst [smem:[#allocation25_spill]] %s1696_s14  ;;  %p66_p1 = scmp.eq.s32.totalorder %s1792_s15, 0 }
  0x16   : > { %p287_p2 = scmp.lt.s32.totalorder %s1696_s14, 3  ;;  %s2081_s3 = sld [smem:[#allocation30_spill]] }
  0x17   : > { %p1173_p4 = scmp.ge.s32.totalorder %s1696_s14, 2  ;;  %s1698_s20 = smov [#allocation8]  }
  0x18   : > { %p1800_p3 = pnand %p1167_p0, %p287_p2  ;;  %s303_s21 = sshll.u32 %s1698_s20, 4  ;;  %s304_s21 = int_to_ptr.vmem [resolvable:$true] %s303_s21 }
  0x19   : > { %s2084_s5 = sld [smem:[#allocation32_spill]]  ;;  %s1699_s26 = smov [#allocation11]  }
  0x1a   : > { %p1238_p5 = pneg %p1800_p3  ;;  %s328_s27 = sshll.u32 %s1699_s26, 4  ;;  %s329_s27 = int_to_ptr.vmem [resolvable:$true] %s328_s27 }
  0x1b   : > { %s2060_s28 = smov 128   ;;  %s2062_s29 = smov 8  }
  0x1c   : > { %s301_s18 = sshll.u32 %s2081_s3, 4  ;;  %p1809_p6 = pnand %p1238_p5, %p66_p1  ;;  %s302_s18 = int_to_ptr.hbm [resolvable:$true] %s301_s18 }
  0x1d   : > { %s1166_s16 = sadd.s32 4294967294, %s1696_s14   ;;  %s43_s17 = sadd.s32 1, %s1692_s13 }
  0x1e   : > { %1241 = dma.hbm_to_vmem [thread:$0]  (!%p1809_p6), %s302_s18, 128, %s304_s21, [#allocation9]  }
  0x1f   : > { %s326_s25 = sshll.u32 %s2084_s5, 4  ;;  %p45_p7 = scmp.ge.s32.totalorder %s43_s17, 2  ;;  %s327_s25 = int_to_ptr.hbm [resolvable:$true] %s326_s25 }
  0x20   : > { %1247 = dma.hbm_to_vmem [thread:$0]  (!%p1809_p6), %s327_s25, 512, %s329_s27, [#allocation12], %s2060_s28, %s2060_s28, %s2062_s29  }
  0x21   : > { %s52_s18 = sadd.s32 1, %s1684_s11  ;;  %p59_p8 = scmp.ne.s32.totalorder %s1684_s11, %s1680_s10 }
  0x22   : > { %p60_p9 = scmp.eq.s32.totalorder %s1696_s14, 0  ;;  %s2112_s17 = smov (%p45_p7, %s43_s17), 0 }
  0x23   : > { %2085 = sst [smem:[#allocation26_spill]] %s2112_s17  ;;  %p65_p11 = scmp.ne.s32.totalorder %s1680_s10, %s1676_s30 }
  0x24   : > { %p1831_p10 = por %p60_p9, %p59_p8  ;;  %s47_s21 = ssub.s32 %s1692_s13, %s2112_s17 }
  0x25   : > { %p274_p12 = scmp.eq.s32.totalorder %s1792_s15, 1  ;;  %p50_p13 = scmp.eq.s32.totalorder %s47_s21, 0 }
  0x26   : > { %p1842_p0 = por %p66_p1, %p65_p11  ;;  %p280_p5 = scmp.eq.s32.totalorder %s1166_s16, 1 }
  0x27   : > { %p1846_p2 = por %p274_p12, %p59_p8  ;;  %p1273_p9 = scmp.lt.s32.totalorder %s1696_s14, 2 }
  0x28   : > { %s1851_s25 = scalar_select %p50_p13, %s1684_s11, %s52_s18  }
  0x29   : > { %p1853_p7 = por %p280_p5, %p65_p11  ;;  %s2066_s27 = sand.u32 1, %s1684_s11  }
  0x2a   : > { %2089 = sst [smem:[#allocation27_spill]] %s1851_s25  ;;  %s1860_s28 = sshll.u32 %s1692_s13, 3 }
  0x2b   : > { %s2090_s26 = scalar_select %p1853_p7, 1, 0 }
  0x2c   : > { %s1864_s21 = sshll.u32 %s2066_s27, 3  ;;  %p1868_p8 = pnand %p1273_p9, %p1831_p10 }
  0x2d   : > { %2091 = sst [smem:[#allocation28_spill]] %s2090_s26  ;;  %s393_s16 = sand.u32 1, %s1696_s14  }
  0x2e   : > { %s2093_s1 = sld [smem:[#allocation29_spill]]  ;;  %s397_s17 = scalar_lea.vmem [#allocation5], %s1864_s21 }
  0x2f   : > { %s405_s13 = sshll.u32 %s397_s17, 4  ;;  %s2094_s4 = sld [smem:[#allocation31_spill]]  ;;  %s406_s13 = int_to_ptr.vmem [resolvable:$true] %s405_s13 }
  0x30   : > { %s1881_s30 = scalar_lea.sflag [#allocation6], %s393_s16  ;;  %s1702_s3 = smov [#allocation10]  }
  0x31   : > { %s314_s18 = sshll.u32 %s1702_s3, 4  ;;  %s2095_s6 = sld [smem:[#allocation33_spill]]  ;;  %s315_s18 = int_to_ptr.vmem [resolvable:$true] %s314_s18 }
  0x32   : > { %s2096_s26 = smov 8   ;;  %s2097_s27 = smov 128  }
  0x33   : > { %s2098_s7 = sld [smem:[#allocation34_spill]]  ;;  %s377_s16 = scalar_lea.vmem [#allocation2], %s1864_s21 }
  0x34   : > { %s401_s5 = scalar_lea.hbm %s2093_s1, %s1860_s28  ;;  %s1704_s1 = smov [#allocation14]  }
  0x35   : > { %s403_s25 = sshll.u32 %s401_s5, 4  ;;  %s312_s20 = sshll.u32 %s2094_s4, 4  ;;  %s404_s25 = int_to_ptr.hbm [resolvable:$true] %s403_s25  ;;  %s313_s20 = int_to_ptr.hbm [resolvable:$true] %s312_s20 }
  0x36   : > { %1260 = dma.hbm_to_vmem [thread:$0]  (!%p1868_p8), %s404_s25, 128, %s406_s13, %s1881_s30  }
  0x37   : > { %s340_s5 = sshll.u32 %s2095_s6, 4  ;;  %s1703_s25 = smov [#allocation13]   ;;  %s341_s5 = int_to_ptr.hbm [resolvable:$true] %s340_s5 }
  0x38   : > { %1244 = dma.hbm_to_vmem [thread:$0]  (!%p1809_p6), %s313_s20, 512, %s315_s18, [#allocation9], %s2097_s27, %s2097_s27, %s2096_s26  }
  0x39   : > { %s354_s13 = sshll.u32 %s2098_s7, 4  ;;  %s342_s3 = sshll.u32 %s1703_s25, 4  ;;  %s355_s13 = int_to_ptr.hbm [resolvable:$true] %s354_s13  ;;  %s343_s3 = int_to_ptr.vmem [resolvable:$true] %s342_s3 }
  0x3a   : > { %1250 = dma.hbm_to_vmem [thread:$0]  (!%p1809_p6), %s341_s5, 512, %s343_s3, [#allocation12], %s2097_s27, %s2097_s27, %s2096_s26  }
  0x3b   : > { %s356_s17 = sshll.u32 %s1704_s1, 4  ;;  %s382_s18 = scalar_lea.hbm %s2050_s0, %s1860_s28  ;;  %s357_s17 = int_to_ptr.vmem [resolvable:$true] %s356_s17 }
  0x3c   : > { %1253 = dma.hbm_to_vmem [thread:$0]  (!%p1809_p6), %s355_s13, 512, %s357_s17, [#allocation15], %s2097_s27, %s2097_s27, %s2096_s26  }
  0x3d   : > { %s386_s25 = sshll.u32 %s377_s16, 4  ;;  %s384_s6 = sshll.u32 %s382_s18, 4  ;;  %s387_s25 = int_to_ptr.vmem [resolvable:$true] %s386_s25  ;;  %s385_s6 = int_to_ptr.hbm [resolvable:$true] %s384_s6 }
  0x3e   : > { %s2099_s5 = sand.u32 1, %s1684_s11   ;;  %s420_s7 = scalar_lea.hbm %s2052_s2, %s1860_s28 }
  0x3f   : > { %s374_s3 = scalar_lea.sflag [#allocation3], %s2099_s5  ;;  %s416_s14 = scalar_lea.vmem [#allocation7], %s1864_s21 }
  0x40   : > { %1257 = dma.hbm_to_vmem [thread:$0]  (!%p1868_p8), %s385_s6, 128, %s387_s25, %s374_s3  }
  0x41   : > { %s424_s8 = sshll.u32 %s416_s14, 4  ;;  %s422_s26 = sshll.u32 %s420_s7, 4  ;;  %s425_s8 = int_to_ptr.vmem [resolvable:$true] %s424_s8  ;;  %s423_s26 = int_to_ptr.hbm [resolvable:$true] %s422_s26 }
  0x42   : > { %1263 = dma.hbm_to_vmem [thread:$0]  (!%p1868_p8), %s423_s26, 128, %s425_s8, %s1881_s30  }
  0x43   : > { %433 = sbr.rel (%p1800_p3) target bundleno = 1124 (0x464), region = 56  ;;  %s1927_s27 = sand.u32 (!%p1800_p3), 1, %s1680_s10  }
  0x44   : > { %s1930_s6 = sshll.u32 (!%p1800_p3), %s1927_s27, 3  ;;  %s436_s28 = scalar_lea.sflag (!%p1800_p3), [#allocation3], %s1927_s27 }
  0x45   : > { %s439_s21 = scalar_lea.vmem (!%p1800_p3), [#allocation2], %s1930_s6 }
  0x48   : > { %1651 = dma.done.wait (%p1842_p0), %s436_s28, 128  }
  0x49   : > { %1653 = vsyncadd (%p1842_p0), %s436_s28, 4294967168  ;;  %s445_s7 = sand.u32 1, %s1792_s15   ;;  %s449_s30 = scalar_lea.vmem [#allocation5], %s1930_s6 }
  0x4a   : > { %s446_s8 = scalar_lea.sflag [#allocation6], %s445_s7 }
  0x4b   : > { %1655 = dma.done.wait (%p1842_p0), %s446_s8, 256  }
  0x4c   : > { %1657 = vsyncadd (%p1842_p0), %s446_s8, 4294967040  ;;  %s459_s14 = scalar_lea.vmem [#allocation7], %s1930_s6 }
  0x4d   : > { %1659 = dma.done.wait (%p66_p1), [#allocation9], 640  }
  0x4e   : > { %1661 = vsyncadd (%p66_p1), [#allocation9], 4294966656 }
  0x4f   : > { %1663 = dma.done.wait (%p66_p1), [#allocation12], 1024  }
  0x50   : > { %1665 = vsyncadd (%p66_p1), [#allocation12], 4294966272 }
  0x51   : > { %1667 = dma.done.wait (%p66_p1), [#allocation15], 512  }
  0x52   : > { %1669 = vsyncadd (%p66_p1), [#allocation15], 4294966784  ;;  %v565_v0 = vld [vmem:[#allocation11 + $0x18] sm:$0xff]  ;;  %v564_v2 = vld [vmem:[#allocation11 + $0x10] sm:$0xff]  ;;  %vm537_vm0 = vcmask 261120   ;;  %vm617_vm1 = vcmask 64512  }
  0x53   : > { %v536_v1 = vld [vmem:[#allocation10 + $0x18] sm:$0xff]  ;;  %581 = vmatpush.msra.mxu1 %v565_v0  ;;  %v535_v3 = vld [vmem:[#allocation10 + $0x10] sm:$0xff]  ;;  %v563_v4 = vld [vmem:[#allocation11 + $0x8] sm:$0xff]  ;;  %s1705_s15 = smov 104   ;;  %s1706_s19 = smov 120  }
  0x54   : > { %553 = vmatpush.msra.mxu0 %v536_v1  ;;  %v534_v5 = vld [vmem:[#allocation10 + $0x8] sm:$0xff]  ;;  %v562_v6 = vld [vmem:[#allocation11] sm:$0xff]  ;;  %s1707_s29 = smov 112   ;;  %v592_v13 = vld [vmem:[#allocation13 + $0x18] sm:$0xff]  ;;  %s1708_s23 = smov 8  }
  0x55   : > { %582 = vmatpush.msra.mxu1 %v564_v2  ;;  %v533_v7 = vld [vmem:[#allocation10] sm:$0xff]  ;;  %v530_v9 = vld [vmem:[%s439_s21] sm:$0xff]  ;;  %608 = vmatpush.msra.mxu2 %v592_v13  ;;  %v616_v24 = vld [vmem:[#allocation8] sm:$0xff]  ;;  %s1709_s13 = smov 16   ;;  %s1710_s17 = smov 24  }
  0x56   : > { %554 = vmatpush.msra.mxu0 %v535_v3  ;;  %v531_v8 = vld [vmem:[%s449_s30] sm:$0xff]  ;;  %v591_v14 = vld [vmem:[#allocation13 + $0x10] sm:$0xff]  ;;  %v590_v15 = vld [vmem:[#allocation13 + $0x8] sm:$0xff]  ;;  %s1207_s4 = sshll.u32 %s1688_s12, 3  ;;  %s2100_s3 = sld [smem:[#allocation35_spill]] }
  0x57   : > { %583 = vmatpush.msra.mxu1 %v563_v4  ;;  %609 = vmatpush.msra.mxu2 %v591_v14  ;;  %v589_v16 = vld [vmem:[#allocation13] sm:$0xff]  ;;  %v532_v17 = vld [vmem:[%s459_s14] sm:$0xff]  ;;  %s987_s16 = scalar_lea.hbm %s2059_s9, %s1207_s4  ;;  %s529_s22 = scalar_lea.vmem [#allocation16], %s1930_s6 }
  0x58   : > { %555 = vmatpush.msra.mxu0 %v534_v5  ;;  %s989_s1 = sshll.u32 %s529_s22, 4  ;;  %s991_s26 = sshll.u32 %s987_s16, 4  ;;  %s990_s1 = int_to_ptr.vmem [resolvable:$true] %s989_s1  ;;  %s992_s26 = int_to_ptr.hbm [resolvable:$true] %s991_s26 }
  0x59   : > { %584 = vmatpush.msra.mxu1 %v562_v6  ;;  %610 = vmatpush.msra.mxu2 %v590_v15  ;;  %s976_s28 = scalar_lea.sflag [#allocation4], %s1927_s27  ;;  %s1612_s12 = sshra.s32 %s992_s26, 4  ;;  %s1613_s12 = int_to_ptr.hbm [resolvable:$true] %s1612_s12 }
  0x5a   : > { %556 = vmatpush.msra.mxu0 %v533_v7  ;;  %1191 = vmatmul.msk.f32.vlgmr.msra.gmra.mxu1 %vm537_vm0, %v531_v8  ;;  %s1614_s21 = scalar_lea.hbm %s1613_s12, 8  ;;  %s1618_s6 = scalar_lea.hbm %s2059_s9, 16 }
  0x5b   : > { %1190 = vmatmul.msk.f32.vlgmr.msra.gmra.mxu0 %vm537_vm0, %v530_v9  ;;  %611 = vmatpush.msra.mxu2 %v589_v16  ;;  %p1615_p1 = scmp.ne.s32.totalorder %s1613_s12, %s1614_s21  ;;  %p1619_p10 = scmp.lt.s32.totalorder %s1613_s12, %s2059_s9 }
  0x5c   : > { %1192 = vmatmul.msk.f32.vlgmr.msra.gmra.mxu2 %vm537_vm0, %v532_v17  ;;  %p1620_p11 = scmp.lt.s32.totalorder %s1618_s6, %s1614_s21 }
  0x5d   : > { %p1616_p3 = pnand %p1615_p1, %p1846_p2 }
  0x5e   : > { %p1621_p12 = por %p1620_p11, %p1619_p10 }
  0x5f   : > { %p1617_p6 = pneg %p1616_p3 }
  0x61   : > { %p1622_p13 = pnand %p1621_p12, %p1617_p6 }
  0xd7   : > { %v586_v10 = vpop.f32.mrf.mxu1 }
  0xd8   : > { %v558_v11 = vpop.f32.mrf.mxu0  ;;  %850 = vrot.lane.b32.xlu2 %v586_v10, %s1705_s15  ;;  %693 = vrot.lane.b32.xlu1 %v586_v10, %s1706_s19 }
  0xd9   : > { %v561_v12 = vmul.f32 0.17677669, %v558_v11  ;;  %772 = vrot.lane.b32.xlu0 %v586_v10, %s1707_s29  ;;  %1193 = vmatpush.xpose.msk.msra.mxu3 %vm617_vm1, %v586_v10 }
  0xdc   : > { %1194 = vmatmul.msk.f32.vlgmr.msra.gmra.mxu3 %vm617_vm1, %v561_v12 }
  0xdf   : > { %v613_v28 = vpop.f32.mrf.mxu2 }
  0xe0   : > { %848 = vrot.lane.b32.xlu2 %v561_v12, %s1705_s15  ;;  %691 = vrot.lane.b32.xlu1 %v561_v12, %s1706_s19 }
  0xe1   : > { %770 = vrot.lane.b32.xlu0 %v561_v12, %s1707_s29  ;;  %686 = vmatpush.msrb.mxu3 %v613_v28 }
 0x132   : > { %v851_v19 = vpop.permute.xlu2 %850 }
 0x13a   : > { %v849_v23 = vpop.permute.xlu2 %848 }
 0x14a   : > { %v694_v18 = vpop.permute.xlu1 %693 }
 0x14b   : > { %v773_v20 = vpop.permute.xlu0 %772  ;;  %1196 = vmatpush.xpose.msk.msrb.mxu0 %vm617_vm1, %v694_v18 }
 0x14c   : > { %1199 = vmatpush.xpose.msk.msrb.mxu2 %vm617_vm1, %v773_v20 }
 0x14f   : > { %1202 = vmatpush.xpose.msk.msra.mxu0 %vm617_vm1, %v851_v19 }
 0x152   : > { %v692_v21 = vpop.permute.xlu1 %691 }
 0x153   : > { %v771_v22 = vpop.permute.xlu0 %770  ;;  %1197 = vmatmul.msk.f32.vlgmr.msrb.gmra.mxu0 %vm617_vm1, %v692_v21 }
 0x154   : > { %1200 = vmatmul.msk.f32.vlgmr.msrb.gmra.mxu2 %vm617_vm1, %v771_v22 }
 0x15b   : > { %1203 = vmatmul.msk.f32.vlgmr.msra.gmra.mxu0 %vm617_vm1, %v849_v23 }
 0x15f   : > { %v641_v25 = vpop.f32.mrf.mxu3 }
 0x160   : > { %v642_v26 = vadd.f32 %v641_v25, %v616_v24 }
 0x162   : > { %v644_v27 = vsel %vm617_vm1, %v642_v26, -inf }
 0x163   : > { %645 = vmax.xlane.f32.xlu0 %v644_v27 }
 0x1d0   : > { %v716_v29 = vpop.f32.mrf.mxu0 }
 0x1d1   : > { %v717_v30 = vadd.f32 %v716_v29, %v616_v24 }
 0x1d3   : > { %v719_v31 = vsel %vm617_vm1, %v717_v30, -inf }
 0x1d4   : > { %720 = vmax.xlane.f32.xlu1 %v719_v31 }
 0x1d6   : > { %v646_v32 = vpop.xlane.xlu0 %645 }
 0x1d7   : > { %v647_v33 = vsub.f32 %v642_v26, %v646_v32  ;;  %v795_v34 = vpop.f32.mrf.mxu2 }
 0x1d8   : > { %v796_v35 = vadd.f32 %v795_v34, %v616_v24  ;;  %v873_v38 = vpop.f32.mrf.mxu0 }
 0x1d9   : > { %v648_v36 = vmul.f32 1.442695, %v647_v33  ;;  %v874_v39 = vadd.f32 %v873_v38, %v616_v24 }
 0x1da   : > { %v798_v37 = vsel %vm617_vm1, %v796_v35, -inf }
 0x1db   : > { %1342 = vpow2.f32 %v648_v36  ;;  %799 = vmax.xlane.f32.xlu2 %v798_v37  ;;  %v876_v41 = vsel %vm617_vm1, %v874_v39, -inf }
 0x1e1   : > { %v1343_v40 = vpop.eup %1342 }
 0x1e2   : > { %v650_v42 = vsel %vm617_vm1, %v1343_v40, 0.0 }
 0x1e3   : > { %877 = vmax.xlane.f32.xlu2 %v876_v41  ;;  %651 = vadd.xlane.f32.xlu0 %v650_v42 }
 0x247   : > { %v721_v43 = vpop.xlane.xlu1 %720 }
 0x248   : > { %v722_v44 = vsub.f32 %v717_v30, %v721_v43 }
 0x24a   : > { %v723_v45 = vmul.f32 1.442695, %v722_v44 }
 0x24c   : > { %1344 = vpow2.f32 %v723_v45 }
 0x24e   : > { %v800_v46 = vpop.xlane.xlu2 %799 }
 0x24f   : > { %v801_v47 = vsub.f32 %v796_v35, %v800_v46 }
 0x251   : > { %v802_v48 = vmul.f32 1.442695, %v801_v47 }
 0x252   : > { %v1983_v49 = vpop.eup %1344 }
 0x253   : > { %1346 = vpow2.f32 %v802_v48  ;;  %v725_v50 = vsel %vm617_vm1, %v1983_v49, 0.0 }
 0x254   : > { %726 = vadd.xlane.f32.xlu1 %v725_v50  ;;  %v945_v50 = vld [vmem:[#allocation14 + $0x10] sm:$0xff] }
 0x256   : > { %v878_v51 = vpop.xlane.xlu2 %877  ;;  %v652_v52 = vpop.xlane.xlu0 %651 }
 0x257   : > { %v879_v53 = vsub.f32 %v874_v39, %v878_v51  ;;  %1348 = vrcp.f32 %v652_v52  ;;  %v664_v61 = vand.u32 2147483648, %v652_v52  ;;  %v662_v63 = vand.u32 2147483647, %v652_v52  ;;  %v944_v51 = vld [vmem:[#allocation14 + $0x8] sm:$0xff] }
 0x258   : > { %vm658_vm3 = vweird.f32 %v652_v52 }
 0x259   : > { %v1987_v54 = vpop.eup %1346  ;;  %v880_v55 = vmul.f32 1.442695, %v879_v53  ;;  %v665_v2 = vor.u32 1.1754944e-38, %v664_v61  ;;  %vm663_vm5 = vcmp.eq.f32.partialorder %v662_v63, 8.507059e+37 }
 0x25a   : > { %v804_v56 = vsel %vm617_vm1, %v1987_v54, 0.0 }
 0x25b   : > { %1350 = vpow2.f32 %v880_v55  ;;  %805 = vadd.xlane.f32.xlu2 %v804_v56 }
 0x25d   : > { %v1349_v57 = vpop.eup %1348 }
 0x25e   : > { %v654_v58 = vmul.f32 %v1349_v57, %v652_v52  ;;  %vm659_vm2 = vweird.f32 %v1349_v57  ;;  %v943_v52 = vld [vmem:[#allocation14] sm:$0xff] }
 0x25f   : > { %vm660_vm4 = vmor %vm658_vm3, %vm659_vm2 }
 0x260   : > { %v655_v59 = vsub.f32 1.0, %v654_v58 }
 0x261   : > { %v1991_v60 = vpop.eup %1350 }
 0x262   : > { %v656_v62 = vmul.f32 %v1349_v57, %v655_v59  ;;  %v882_v0 = vsel %vm617_vm1, %v1991_v60, 0.0  ;;  %v1341_v59 = vld [vmem:[%s2100_s3] ss:$0 sm:$0xff] }
 0x263   : > { %883 = vadd.xlane.f32.xlu0 %v882_v0 }
 0x264   : > { %v657_v1 = vadd.f32 %v1349_v57, %v656_v62 }
 0x266   : > { %v661_v3 = vsel %vm660_vm4, %v1349_v57, %v657_v1  ;;  %vm939_vm4 = vcmask 130048  }
 0x267   : > { %v666_v4 = vsel %vm663_vm5, %v665_v2, %v661_v3  ;;  %vm941_vm5 = vcmask 195584  }
 0x268   : > { %v667_v5 = vmul.f32 %v1343_v40, %v666_v4 }
 0x26a   : > { %1195 = vmatmul.msk.f32.vlgmr.msrb.gmra.mxu3 %vm617_vm1, %v667_v5 }
 0x26d   : > { %744 = vrot.lane.b32.xlu1 %v613_v28, %s1706_s19 }
 0x273   : > { %822 = vrot.lane.b32.xlu2 %v613_v28, %s1707_s29 }
 0x277   : > { %900 = vrot.lane.b32.xlu0 %v613_v28, %s1705_s15 }
 0x2c7   : > { %v727_v6 = vpop.xlane.xlu1 %726 }
 0x2c8   : > { %1352 = vrcp.f32 %v727_v6  ;;  %v739_v14 = vand.u32 2147483648, %v727_v6  ;;  %vm733_vm7 = vweird.f32 %v727_v6  ;;  %v737_v18 = vand.u32 2147483647, %v727_v6 }
 0x2ca   : > { %v740_v22 = vor.u32 1.1754944e-38, %v739_v14  ;;  %vm738_vm10 = vcmp.eq.f32.partialorder %v737_v18, 8.507059e+37 }
 0x2ce   : > { %v1353_v7 = vpop.eup %1352  ;;  %v806_v8 = vpop.xlane.xlu2 %805 }
 0x2cf   : > { %v729_v9 = vmul.f32 %v1353_v7, %v727_v6  ;;  %1354 = vrcp.f32 %v806_v8  ;;  %vm734_vm6 = vweird.f32 %v1353_v7  ;;  %v818_v20 = vand.u32 2147483648, %v806_v8 }
 0x2d0   : > { %vm735_vm8 = vmor %vm733_vm7, %vm734_vm6  ;;  %v816_v24 = vand.u32 2147483647, %v806_v8  ;;  %vm812_vm11 = vweird.f32 %v806_v8 }
 0x2d1   : > { %v730_v10 = vsub.f32 1.0, %v729_v9  ;;  %v819_v28 = vor.u32 1.1754944e-38, %v818_v20 }
 0x2d2   : > { %vm817_vm13 = vcmp.eq.f32.partialorder %v816_v24, 8.507059e+37 }
 0x2d3   : > { %v731_v11 = vmul.f32 %v1353_v7, %v730_v10 }
 0x2d5   : > { %v1355_v12 = vpop.eup %1354  ;;  %v732_v13 = vadd.f32 %v1353_v7, %v731_v11 }
 0x2d6   : > { %v808_v15 = vmul.f32 %v1355_v12, %v806_v8  ;;  %v823_v16 = vpop.permute.xlu2 %822  ;;  %v884_v17 = vpop.xlane.xlu0 %883  ;;  %vm813_vm9 = vweird.f32 %v1355_v12 }
 0x2d7   : > { %1356 = vrcp.f32 %v884_v17  ;;  %843 = vmatpush.msra.mxu3 %v823_v16  ;;  %v736_v21 = vsel %vm735_vm8, %v1353_v7, %v732_v13  ;;  %vm814_vm12 = vmor %vm812_vm11, %vm813_vm9  ;;  %v896_v36 = vand.u32 2147483648, %v884_v17  ;;  %v894_v38 = vand.u32 2147483647, %v884_v17 }
 0x2d8   : > { %v809_v19 = vsub.f32 1.0, %v808_v15  ;;  %v741_v26 = vsel %vm738_vm10, %v740_v22, %v736_v21  ;;  %vm890_vm15 = vweird.f32 %v884_v17 }
 0x2d9   : > { %v742_v33 = vmul.f32 %v1983_v49, %v741_v26  ;;  %v897_v40 = vor.u32 1.1754944e-38, %v896_v36  ;;  %vm895_vm3 = vcmp.eq.f32.partialorder %v894_v38, 8.507059e+37  ;;  %v946_v49 = vld [vmem:[#allocation14 + $0x18] sm:$0xff] }
 0x2da   : > { %v810_v23 = vmul.f32 %v1355_v12, %v809_v19  ;;  %966 = vmatpush.msra.mxu2 %v946_v49 }
 0x2dc   : > { %v811_v25 = vadd.f32 %v1355_v12, %v810_v23  ;;  %967 = vmatpush.msra.mxu2 %v945_v50 }
 0x2dd   : > { %v1357_v27 = vpop.eup %1356 }
 0x2de   : > { %v815_v29 = vsel %vm814_vm12, %v1355_v12, %v811_v25  ;;  %v886_v30 = vmul.f32 %v1357_v27, %v884_v17  ;;  %vm891_vm14 = vweird.f32 %v1357_v27  ;;  %968 = vmatpush.msra.mxu2 %v944_v51 }
 0x2df   : > { %v820_v31 = vsel %vm817_vm13, %v819_v28, %v815_v29  ;;  %v745_v32 = vpop.permute.xlu1 %744  ;;  %vm892_vm2 = vmor %vm890_vm15, %vm891_vm14 }
 0x2e0   : > { %v887_v34 = vsub.f32 1.0, %v886_v30  ;;  %765 = vmatpush.msrb.mxu1 %v745_v32  ;;  %v821_v35 = vmul.f32 %v1987_v54, %v820_v31  ;;  %969 = vmatpush.msra.mxu2 %v943_v52 }
 0x2e1   : > { %1198 = vmatmul.msk.f32.vlgmr.msrb.gmra.mxu1 %vm617_vm1, %v742_v33 }
 0x2e2   : > { %v888_v37 = vmul.f32 %v1357_v27, %v887_v34  ;;  %1201 = vmatmul.msk.f32.vlgmr.msra.gmra.mxu3 %vm617_vm1, %v821_v35 }
 0x2e4   : > { %v889_v39 = vadd.f32 %v1357_v27, %v888_v37 }
 0x2e6   : > { %v893_v41 = vsel %vm892_vm2, %v1357_v27, %v889_v39 }
 0x2e7   : > { %v898_v42 = vsel %vm895_vm3, %v897_v40, %v893_v41 }
 0x2e8   : > { %v899_v43 = vmul.f32 %v1991_v60, %v898_v42 }
 0x2e9   : > { %v901_v44 = vpop.permute.xlu0 %900 }
 0x2ea   : > { %921 = vmatpush.msra.mxu1 %v901_v44 }
 0x2eb   : > { %1204 = vmatmul.msk.f32.vlgmr.msra.gmra.mxu1 %vm617_vm1, %v899_v43 }
 0x2ed   : > { %v688_v45 = vpop.f32.mrf.mxu3 }
 0x35e   : > { %v767_v46 = vpop.f32.mrf.mxu1 }
 0x35f   : > { %927 = vrot.lane.b32.xlu1 %v767_v46, %s1708_s23 }
 0x365   : > { %v845_v47 = vpop.f32.mrf.mxu3 }
 0x366   : > { %931 = vrot.lane.b32.xlu0 %v845_v47, %s1709_s13 }
 0x368   : > { %v923_v48 = vpop.f32.mrf.mxu1 }
 0x369   : > { %935 = vrot.lane.b32.xlu2 %v923_v48, %s1710_s17 }
 0x3c3   : > { %v936_v56 = vpop.permute.xlu2 %935 }
 0x3d1   : > { %v928_v53 = vpop.permute.xlu1 %927 }
 0x3d2   : > { %v938_v54 = vsel %vm617_vm1, %v688_v45, %v928_v53 }
 0x3d8   : > { %v932_v55 = vpop.permute.xlu0 %931 }
 0x3d9   : > { %v940_v57 = vsel %vm939_vm4, %v938_v54, %v932_v55 }
 0x3da   : > { %v942_v58 = vsel %vm941_vm5, %v940_v57, %v936_v56 }
 0x3db   : > { %1205 = vmatmul.msk.f32.vlgmr.msra.gmra.mxu2 %vm537_vm0, %v942_v58 }
 0x45e   : > { %v971_v60 = vpop.f32.mrf.mxu2 }
 0x45f   : > { %v972_v61 = vadd.f32 %v1341_v59, %v971_v60 }
 0x461   : > { %974 = vst.msk [vmem:[%s529_s22] sm:$0xff] %vm537_vm0, %v972_v61 }
 0x462   : > { %1625 = shalt.err (!%p1622_p13)
}
 0x463   : > { %1236 = dma.vmem_to_hbm [thread:$0]  (%p1846_p2), %s990_s1, 128, %s992_s26, %s976_s28  }
 0x464 PF: > { %s2101_s27 = sld [smem:[#allocation23_spill]]  ;;  %p1265_p0 = pnand %p1173_p4, %p1853_p7 }
 0x465   : > { %s2103_s19 = sld [smem:[#allocation25_spill]] }
 0x466   : > { %p1266_p5 = pneg %p1265_p0 }
 0x46a   : > { %s1003_s29 = sand.u32 1, %s2101_s27  }
 0x46b   : > { %s1004_s23 = scalar_lea.sflag [#allocation4], %s1003_s29 }
 0x46c   : > { %1671 = dma.done.wait (%p1266_p5), %s1004_s23, 128  }
 0x46d   : > { %1673 = vsyncadd (%p1266_p5), %s1004_s23, 4294967168  ;;  %s31_s14 = sadd.s32 1, %s2103_s19   ;;  %s2104_s13 = sld [smem:[#allocation27_spill]] }
 0x46e   : > { %p28_p9 = scmp.ge.s32.totalorder %s31_s14, 4   ;;  %s2105_s12 = sld [smem:[#allocation24_spill]] }
 0x46f   : > { %s2106_s24 = sld [smem:[#allocation26_spill]]  ;;  %s2107_s30 = smov %s1680_s10 }
 0x470   : > { %s2108_s10 = smov %s1684_s11 }
 0x471   :  { %30 = sbr.rel (!%p28_p9) target bundleno = 19 (0x13), region = 146 }
 0x473   : > { %s2109_s11 = smov %s2104_s13 }
 0x475   : > { %s2110_s13 = smov %s2106_s24 }
 0x476   :  { %1010 = vsyncpa [#allocation3], 1 }
 0x477   :  { %1012 = vsyncpa [#allocation3 + $0x1], 1 }
 0x478   :  { %1013 = vsyncpa [#allocation6], 1 }
 0x479   :  { %1015 = vsyncpa [#allocation6 + $0x1], 1 }
 0x47a   :  { %1016 = vsyncpa [#allocation9], 1 }
 0x47b   :  { %1017 = vsyncpa [#allocation12], 1 }
 0x47c   :  { %1018 = vsyncpa [#allocation15], 1 }
 0x47d   :  { %1019 = vsyncpa [#allocation4], 1 }
 0x47e   :  { %1021 = vsyncpa [#allocation4 + $0x1], 1 }

</bundles_post_ra>
